<compile_context>
chip_gen: v6e
topology: v6e:2x2x1
jax: 0.10.0
libtpu: 0.0.40
codegen_flags: <defaults>
</compile_context>

<pallas_src>
import jax
import jax.numpy as jnp
from jax.experimental import pallas as pl
from jax.experimental.pallas import tpu as pltpu


def _kpt_of_kernel(x_ref, w1_ref, w2_ref, w3_ref, tb_ref, o_ref):
    # x: (TR, 128) in its HBM dtype (f32 here); cast to bf16 for the MXU.
    x = x_ref[...].astype(jnp.bfloat16)

    # Packed shifts/bias: (1, 128) f32 = [t1 (64) | t2 (32) | b3 (9) | pad].
    tb = tb_ref[...]
    t1 = tb[:, 0:64]
    t2 = tb[:, 64:96]
    b3 = tb[:, 96:105]

    # layer 1: conv1(128->64) with BN1 scale folded into W, shift + ReLU
    h1 = jnp.dot(x, w1_ref[...], preferred_element_type=jnp.float32)       # (TR, 64)
    h1 = jnp.maximum(h1 + t1, 0.0)

    # layer 2: conv2(64->32) with BN2 scale folded into W, shift + ReLU
    h2 = jnp.dot(h1.astype(jnp.bfloat16), w2_ref[...],
                 preferred_element_type=jnp.float32)                       # (TR, 32)
    h2 = jnp.maximum(h2 + t2, 0.0)

    # layer 3: conv3(32->9), bias only, no activation
    y = jnp.dot(h2.astype(jnp.bfloat16), w3_ref[...],
                preferred_element_type=jnp.float32) + b3                   # (TR, 9)
    o_ref[...] = y.astype(o_ref.dtype)


def _pick_tile_rows(rows, *, max_tile=1024, min_steps=8):
    """Row-tile heuristic:
      - big enough to approach the HBM roofline (~512-1024 rows is plenty),
      - at least `min_steps` grid steps so the auto-pipeliner has real overlap,
      - an even step count when possible (v7x shards the parallel axis over
        2 TensorCores),
      - multiple of 8 sublanes.
    """
    tile = min(max_tile, max(1, -(-rows // min_steps)))
    tile = max(8, -(-tile // 8) * 8)
    steps = -(-rows // tile)
    if steps > 1 and steps % 2:
        alt = max(8, -(-(-(-rows // (steps + 1))) // 8) * 8)
        if -(-rows // alt) % 2 == 0:
            tile = alt
    return tile


def kpt_of_net_forward(point_features, kernel_params, *,
                       tile_rows=None, out_dtype=jnp.float32):
    """point_features: (B, N, 128)  ->  (B, N, 9)."""
    B, N, C_in = point_features.shape
    assert C_in == 128
    rows = B * N

    if tile_rows is None:
        tile_rows = _pick_tile_rows(rows)
    tile_rows = max(8, -(-tile_rows // 8) * 8)

    # Free, dtype-preserving reshape; bf16 cast happens inside the kernel.
    x = point_features.reshape(rows, C_in)

    (w1, w2, w3, tb) = kernel_params

    grid_steps = pl.cdiv(rows, tile_rows)

    def row_spec(c):
        return pl.BlockSpec((tile_rows, c), lambda i: (i, 0))

    def full_spec(shape):
        return pl.BlockSpec(shape, lambda i: (0, 0))

    # Honest end-to-end traffic: f32 x read, bf16 weights, packed f32 shifts,
    # out write in out_dtype.  No wrapper-side cast/pad passes anymore.
    flops = 2 * rows * (128 * 64 + 64 * 32 + 32 * 9)
    bytes_accessed = (rows * 128 * x.dtype.itemsize
                      + rows * 9 * jnp.dtype(out_dtype).itemsize
                      + (128 * 64 + 64 * 32 + 32 * 9) * 2
                      + 128 * 4)
    cost = pl.CostEstimate(flops=flops, transcendentals=0,
                           bytes_accessed=bytes_accessed)

    out = pl.pallas_call(
        _kpt_of_kernel,
        out_shape=jax.ShapeDtypeStruct((rows, 9), out_dtype),
        grid_spec=pltpu.PrefetchScalarGridSpec(
            num_scalar_prefetch=0,
            grid=(grid_steps,),
            in_specs=[
                row_spec(128),            # x tile (native dtype, cast in-kernel)
                full_spec((128, 64)),     # w1 * bn1_scale (bf16)
                full_spec((64, 32)),      # w2 * bn2_scale (bf16)
                full_spec((32, 9)),       # w3             (bf16)
                full_spec((1, 128)),      # packed [t1|t2|b3|pad] (f32)
            ],
            out_specs=row_spec(9),        # keep 9-wide in HBM (no lane pad)
        ),
        compiler_params=pltpu.CompilerParams(
            dimension_semantics=("parallel",)),
        cost_estimate=cost,
    )(x, w1, w2, w3, tb)

    return out.reshape(B, N, 9)


def make_params(key):
    """Deterministic synthetic parameters matching the PyTorch module shapes.

    Conv1d(k=1) weights (out, in, 1) in PyTorch are stored as (in, out) so the
    kernel does x @ W.  BatchNorm (gamma, beta, running_mean, running_var,
    eps=1e-5) inference stats are folded with the conv bias: the per-channel
    scale is multiplied INTO the weight matrix; the shifts for all three
    layers are packed into a single (1, 128) f32 vector.

    Returns (kernel_params, reference_params_f32).
    """
    ks = jax.random.split(key, 12)
    eps = 1e-5

    def conv_w(k, cin, cout):
        return jax.random.normal(k, (cin, cout), jnp.float32) * 0.05

    # --- layer 1: conv1 (128->64) + bn1 ---
    w1 = conv_w(ks[0], 128, 64)
    cb1 = jax.random.normal(ks[1], (64,), jnp.float32) * 0.01
    g1 = 1.0 + 0.1 * jax.random.normal(ks[2], (64,), jnp.float32)
    be1 = 0.1 * jax.random.normal(ks[3], (64,), jnp.float32)
    mu1 = 0.05 * jax.random.normal(ks[4], (64,), jnp.float32)
    var1 = 1.0 + 0.1 * jax.random.uniform(ks[5], (64,), jnp.float32)
    s1 = g1 / jnp.sqrt(var1 + eps)
    t1 = (cb1 - mu1) * s1 + be1
    w1f = w1 * s1[None, :]                      # fold BN scale into weights

    # --- layer 2: conv2 (64->32) + bn2 ---
    w2 = conv_w(ks[6], 64, 32)
    cb2 = jax.random.normal(ks[7], (32,), jnp.float32) * 0.01
    g2 = 1.0 + 0.1 * jax.random.normal(ks[8], (32,), jnp.float32)
    be2 = 0.1 * jax.random.normal(ks[9], (32,), jnp.float32)
    mu2 = 0.05 * jax.random.normal(ks[10], (32,), jnp.float32)
    var2 = 1.0 + 0.1 * jax.random.uniform(ks[11], (32,), jnp.float32)
    s2 = g2 / jnp.sqrt(var2 + eps)
    t2 = (cb2 - mu2) * s2 + be2
    w2f = w2 * s2[None, :]

    # --- layer 3: conv3 (32->9), bias only ---
    k_w3, k_b3 = jax.random.split(jax.random.fold_in(key, 99))
    w3 = conv_w(k_w3, 32, 9)
    b3 = jax.random.normal(k_b3, (9,), jnp.float32) * 0.01

    # Packed shift/bias vector: [t1 | t2 | b3 | zeros] -> (1, 128) f32.
    tb = jnp.concatenate([t1, t2, b3, jnp.zeros((23,), jnp.float32)]).reshape(1, 128)

    kernel_params = (w1f.astype(jnp.bfloat16),
                     w2f.astype(jnp.bfloat16),
                     w3.astype(jnp.bfloat16),
                     tb)
    ref_params = (w1f, t1.reshape(1, 64),
                  w2f, t2.reshape(1, 32),
                  w3, b3.reshape(1, 9))
    return kernel_params, ref_params


def reference_forward(point_features, ref_params):
    """Pure-JAX f32 reference (same math, full precision)."""
    (w1, t1, w2, t2, w3, b3) = ref_params
    B, N, _ = point_features.shape
    x = point_features.reshape(B * N, 128)
    h1 = jnp.maximum(x @ w1 + t1, 0.0)
    h2 = jnp.maximum(h1 @ w2 + t2, 0.0)
    return (h2 @ w3 + b3).reshape(B, N, 9)


if __name__ == "__main__":
    key = jax.random.PRNGKey(0)
    k_x, k_p = jax.random.split(key)

    kernel_params, ref_params = make_params(k_p)

    # Case 1: rows divisible by the auto-picked tile (256 rows -> 8 steps of 32).
    B, N = 2, 128
    pf = jax.random.normal(k_x, (B, N, 128), jnp.float32)
    out = jax.block_until_ready(kpt_of_net_forward(pf, kernel_params))
    ref = reference_forward(pf, ref_params)
    assert out.shape == (B, N, 9)
    # bf16 inputs/weights with f32 accumulation -> looser tolerance than pure f32.
    assert jnp.allclose(out, ref, atol=5e-2, rtol=5e-2), \
        float(jnp.max(jnp.abs(out - ref)))

    # Case 2: awkward row count exercises the partial last block (no pad/slice).
    B2, N2 = 2, 100
    pf2 = jax.random.normal(jax.random.fold_in(k_x, 1), (B2, N2, 128), jnp.float32)
    out2 = jax.block_until_ready(kpt_of_net_forward(pf2, kernel_params))
    ref2 = reference_forward(pf2, ref_params)
    assert out2.shape == (B2, N2, 9)
    assert jnp.allclose(out2, ref2, atol=5e-2, rtol=5e-2), \
        float(jnp.max(jnp.abs(out2 - ref2)))

    print("KERNEL_OK")
</pallas_src>

<mosaic_0001>
module attributes {stable_mosaic.version = 11 : i64} {
  func.func @_kpt_of_kernel(%arg0: i32, %arg1: memref<32x128xf32, #tpu.memory_space<vmem>>, %arg2: memref<128x64xbf16, #tpu.memory_space<vmem>>, %arg3: memref<64x32xbf16, #tpu.memory_space<vmem>>, %arg4: memref<32x9xbf16, #tpu.memory_space<vmem>>, %arg5: memref<1x128xf32, #tpu.memory_space<vmem>>, %arg6: memref<32x9xf32, #tpu.memory_space<vmem>>) attributes {dimension_semantics = [#tpu.dimension_semantics<parallel>], iteration_bounds = array<i64: 8>, scalar_prefetch = 0 : i64, scratch_operands = 0 : i64, tpu.core_type = #tpu.core_type<tc>, window_params = [{transform_indices = @transform_0, window_bounds = array<i64: 32, 128>}, {pipeline_mode = #tpu.pipeline_mode<synchronous>, transform_indices = @transform_1, window_bounds = array<i64: 128, 64>}, {pipeline_mode = #tpu.pipeline_mode<synchronous>, transform_indices = @transform_2, window_bounds = array<i64: 64, 32>}, {pipeline_mode = #tpu.pipeline_mode<synchronous>, transform_indices = @transform_3, window_bounds = array<i64: 32, 9>}, {pipeline_mode = #tpu.pipeline_mode<synchronous>, transform_indices = @transform_4, window_bounds = array<i64: 1, 128>}, {transform_indices = @transform_5, window_bounds = array<i64: 32, 9>}]} {
    %c0 = arith.constant 0 : index
    %c0_0 = arith.constant 0 : index
    %0 = vector.load %arg1[%c0, %c0_0] : memref<32x128xf32, #tpu.memory_space<vmem>>, vector<32x128xf32>
    %1 = arith.truncf %0 : vector<32x128xf32> to vector<32x128xbf16>
    %c0_1 = arith.constant 0 : index
    %c0_2 = arith.constant 0 : index
    %2 = vector.load %arg5[%c0_1, %c0_2] : memref<1x128xf32, #tpu.memory_space<vmem>>, vector<1x128xf32>
    %3 = vector.extract_strided_slice %2 {offsets = [0, 0], sizes = [1, 64], strides = [1, 1]} : vector<1x128xf32> to vector<1x64xf32>
    %4 = vector.extract_strided_slice %2 {offsets = [0, 64], sizes = [1, 32], strides = [1, 1]} : vector<1x128xf32> to vector<1x32xf32>
    %5 = vector.extract_strided_slice %2 {offsets = [0, 96], sizes = [1, 9], strides = [1, 1]} : vector<1x128xf32> to vector<1x9xf32>
    %c0_3 = arith.constant 0 : index
    %c0_4 = arith.constant 0 : index
    %6 = vector.load %arg2[%c0_3, %c0_4] : memref<128x64xbf16, #tpu.memory_space<vmem>>, vector<128x64xbf16>
    %cst = arith.constant dense<0.000000e+00> : vector<32x64xf32>
    %7 = tpu.matmul %1, %6, %cst {dimension_numbers = #tpu.dot_dimension_numbers<[1], [0], [0], [1], [0, 0, 1, 1], [], []>} : vector<32x128xbf16>, vector<128x64xbf16>, vector<32x64xf32> -> vector<32x64xf32>
    %8 = vector.broadcast %3 : vector<1x64xf32> to vector<32x64xf32>
    %9 = arith.addf %7, %8 : vector<32x64xf32>
    %cst_5 = arith.constant 0.000000e+00 : f32
    %10 = vector.broadcast %cst_5 : f32 to vector<32x64xf32>
    %11 = arith.maximumf %9, %10 : vector<32x64xf32>
    %12 = arith.truncf %11 : vector<32x64xf32> to vector<32x64xbf16>
    %c0_6 = arith.constant 0 : index
    %c0_7 = arith.constant 0 : index
    %13 = vector.load %arg3[%c0_6, %c0_7] : memref<64x32xbf16, #tpu.memory_space<vmem>>, vector<64x32xbf16>
    %cst_8 = arith.constant dense<0.000000e+00> : vector<32x32xf32>
    %14 = tpu.matmul %12, %13, %cst_8 {dimension_numbers = #tpu.dot_dimension_numbers<[1], [0], [0], [1], [0, 0, 1, 1], [], []>} : vector<32x64xbf16>, vector<64x32xbf16>, vector<32x32xf32> -> vector<32x32xf32>
    %15 = vector.broadcast %4 : vector<1x32xf32> to vector<32x32xf32>
    %16 = arith.addf %14, %15 : vector<32x32xf32>
    %cst_9 = arith.constant 0.000000e+00 : f32
    %17 = vector.broadcast %cst_9 : f32 to vector<32x32xf32>
    %18 = arith.maximumf %16, %17 : vector<32x32xf32>
    %19 = arith.truncf %18 : vector<32x32xf32> to vector<32x32xbf16>
    %c0_10 = arith.constant 0 : index
    %c0_11 = arith.constant 0 : index
    %20 = vector.load %arg4[%c0_10, %c0_11] : memref<32x9xbf16, #tpu.memory_space<vmem>>, vector<32x9xbf16>
    %cst_12 = arith.constant dense<0.000000e+00> : vector<32x9xf32>
    %21 = tpu.matmul %19, %20, %cst_12 {dimension_numbers = #tpu.dot_dimension_numbers<[1], [0], [0], [1], [0, 0, 1, 1], [], []>} : vector<32x32xbf16>, vector<32x9xbf16>, vector<32x9xf32> -> vector<32x9xf32>
    %22 = vector.broadcast %5 : vector<1x9xf32> to vector<32x9xf32>
    %23 = arith.addf %21, %22 : vector<32x9xf32>
    %c0_13 = arith.constant 0 : index
    %c0_14 = arith.constant 0 : index
    %24 = vector.load %arg6[%c0_13, %c0_14] : memref<32x9xf32, #tpu.memory_space<vmem>>, vector<32x9xf32>
    tpu.vector_store %arg6[%c0_13, %c0_14], %23 {strides = array<i32>} : memref<32x9xf32, #tpu.memory_space<vmem>>, vector<32x9xf32>,
    return
  }
  func.func @transform_0(%arg0: i32) -> (i32, i32) {
    %c0_i32 = arith.constant 0 : i32
    %c0_i32_0 = arith.constant 0 : i32
    return %arg0, %c0_i32 : i32, i32
  }
  func.func @transform_1(%arg0: i32) -> (i32, i32) {
    %c0_i32 = arith.constant 0 : i32
    %c0_i32_0 = arith.constant 0 : i32
    %c0_i32_1 = arith.constant 0 : i32
    return %c0_i32, %c0_i32_0 : i32, i32
  }
  func.func @transform_2(%arg0: i32) -> (i32, i32) {
    %c0_i32 = arith.constant 0 : i32
    %c0_i32_0 = arith.constant 0 : i32
    %c0_i32_1 = arith.constant 0 : i32
    return %c0_i32, %c0_i32_0 : i32, i32
  }
  func.func @transform_3(%arg0: i32) -> (i32, i32) {
    %c0_i32 = arith.constant 0 : i32
    %c0_i32_0 = arith.constant 0 : i32
    %c0_i32_1 = arith.constant 0 : i32
    return %c0_i32, %c0_i32_0 : i32, i32
  }
  func.func @transform_4(%arg0: i32) -> (i32, i32) {
    %c0_i32 = arith.constant 0 : i32
    %c0_i32_0 = arith.constant 0 : i32
    %c0_i32_1 = arith.constant 0 : i32
    return %c0_i32, %c0_i32_0 : i32, i32
  }
  func.func @transform_5(%arg0: i32) -> (i32, i32) {
    %c0_i32 = arith.constant 0 : i32
    %c0_i32_0 = arith.constant 0 : i32
    return %arg0, %c0_i32 : i32, i32
  }
}

</mosaic_0001>

<bundles_post_ra>
// kernel: tpu_custom_call.1
= control target key start
LH: loop header
LB: loop body
LE: loop exit
PB: predicated region body
PF: predicated region fallthrough
CT: control target
= control target key end

     0   :  { %10 = vsyncpa [#allocation3], 0  ;;  %s1024_s0 = inlined_call_operand.hbm [shape: f32[256,128], index: 0, kind: input, shape index: {}]   ;;  %s1025_s1 = inlined_call_operand.vmem [shape: bf16[128,64], index: 1, kind: input, shape index: {}]   ;;  %s1026_s2 = inlined_call_operand.vmem [shape: bf16[64,32], index: 2, kind: input, shape index: {}]   ;;  %s1027_s3 = inlined_call_operand.vmem [shape: bf16[32,9], index: 3, kind: input, shape index: {}]   ;;  %s1028_s4 = inlined_call_operand.vmem [shape: f32[1,128], index: 4, kind: input, shape index: {}]   ;;  %s1029_s5 = inlined_call_operand.vmem [shape: f32[256,9], index: 5, kind: output, shape index: {}]  }
   0x1   :  { %12 = vsyncpa [#allocation3 + $0x1], 0  ;;  %s873_s18 = smov 0   ;;  %s875_s19 = smov 0  }
   0x2   :  { %s877_s20 = smov 0   ;;  %s879_s21 = smov 0  }
   0x3 LB: > { %s624_s22 = sadd.s32 4294967295, %s836_s21   ;;  %s893_s23 = sadd.s32 1, %s836_s21   ;;  %s836_s21 = sphi %s879_s21, %s1038_s21   ;;  %s832_s20 = sphi %s877_s20, %s1037_s20   ;;  %s828_s19 = sphi %s875_s19, %s1036_s19   ;;  %s824_s18 = sphi %s873_s18, %s1035_s18  }
   0x4   : > { %s22_s24 = ssub.s32 %s836_s21, %s893_s23  ;;  %s25_s25 = sadd.s32 1, %s832_s20 }
   0x5   : > { %p23_p0 = scmp.eq.s32.totalorder %s22_s24, 0  ;;  %p32_p1 = scmp.ne.s32.totalorder %s832_s20, %s828_s19 }
   0x6   : > { %p33_p2 = scmp.eq.s32.totalorder %s836_s21, 0  ;;  %p38_p3 = scmp.ne.s32.totalorder %s828_s19, %s824_s18 }
   0x7   : > { %s903_s26 = scalar_select %p23_p0, %s832_s20, %s25_s25  }
   0x8   : > { %p34_p4 = por %p33_p2, %p32_p1  ;;  %p39_p5 = scmp.eq.s32.totalorder %s624_s22, 0 }
   0x9   : > { %p723_p6 = scmp.lt.s32.totalorder %s836_s21, 8  ;;  %s184_s28 = sand.u32 1, %s832_s20  }
   0xa   : > { %p908_p7 = por %p39_p5, %p38_p3  ;;  %s628_s29 = sshll.u32 %s184_s28, 5 }
   0xb   : > { %s656_s30 = sshll.u32 %s836_s21, 9  ;;  %s188_s9 = scalar_lea.vmem [#allocation2], %s628_s29 }
   0xc   : > { %s1031_s27 = scalar_select %p908_p7, 1, 0 }
   0xd   : > { %s917_s8 = scalar_lea.hbm %s1024_s0, %s656_s30  ;;  %s195_s10 = sshll.u32 %s188_s9, 4  ;;  %s919_s10 = int_to_ptr.vmem [resolvable:$true] %s195_s10 }
   0xe   : > { %p921_p8 = pnand %p723_p6, %p34_p4  ;;  %s926_s12 = scalar_lea.sflag [#allocation3], %s184_s28 }
   0xf   : > { %s774_s13 = scalar_lea.hbm %s917_s8, 512  ;;  %s779_s16 = scalar_lea.hbm %s1024_s0, 4096 }
  0x10   : > { %p775_p10 = scmp.ne.s32.totalorder %s917_s8, %s774_s13  ;;  %p776_p11 = pneg %p921_p8 }
  0x11   : > { %p780_p0 = scmp.lt.s32.totalorder %s917_s8, %s1024_s0  ;;  %p781_p1 = scmp.lt.s32.totalorder %s779_s16, %s774_s13 }
  0x12   : > { %p777_p12 = pnand %p776_p11, %p775_p10 }
  0x13   : > { %p782_p2 = por %p781_p1, %p780_p0 }
  0x14   : > { %p778_p13 = pneg %p777_p12 }
  0x16   : > { %p783_p3 = pnand %p782_p2, %p778_p13 }
  0x18   : > { %786 = shalt.err (!%p783_p3)
}
  0x19   : > { %s787_s24 = scalar_lea.vmem %s919_s10, 512  ;;  %s838_s25 = smov [#allocation2]  }
  0x1a   : > { %p788_p4 = scmp.ne.s32.totalorder %s919_s10, %s787_s24  ;;  %s792_s28 = sshll.u32 %s838_s25, 4  ;;  %s793_s28 = int_to_ptr.vmem [resolvable:$false] %s792_s28 }
  0x1b   : > { %s794_s29 = scalar_lea.vmem %s793_s28, 1024  ;;  %p795_p10 = scmp.lt.s32.totalorder %s919_s10, %s793_s28 }
  0x1c   : > { %p790_p5 = pnand %p788_p4, %p776_p11  ;;  %p796_p12 = scmp.lt.s32.totalorder %s794_s29, %s787_s24 }
  0x1e   : > { %p791_p6 = pneg %p790_p5  ;;  %p797_p9 = por %p796_p12, %p795_p10 }
  0x20   : > { %p798_p7 = pnand %p797_p9, %p791_p6 }
  0x22   : > { %801 = shalt.err (!%p798_p7)
}
  0x23   : > { %s839_s30 = smov 128   ;;  %s840_s6 = smov 8  }
  0x24   : > { %722 = dma.hbm_to_vmem [thread:$0]  (!%p921_p8), %s917_s8, 512, %s919_s10, %s926_s12, %s839_s30, %s839_s30, %s840_s6  }
  0x25   : > { %p203_p11 = scmp.lt.s32.totalorder %s836_s21, 9  ;;  %p1033_p13 = scmp.ge.s32.totalorder %s836_s21, 1 }
  0x27   : > { %p204_p0 = pnand %p1033_p13, %p203_p11 }
  0x28   : > { %s209_s7 = sand.u32 (!%p204_p0), 1, %s828_s19   ;;  %p1034_p7 = scmp.ne.s32.totalorder (!%p204_p0), %s1031_s27, 0 }
  0x29   : > { %207 = sbr.rel (%p204_p0) target bundleno = 694 (0x2b6), region = 40  ;;  %s632_s9 = sshll.u32 (!%p204_p0), %s209_s7, 5 }
  0x2a   : > { %s210_s13 = scalar_lea.sflag (!%p204_p0), [#allocation3], %s209_s7  ;;  %s951_s14 = scalar_lea.vmem (!%p204_p0), [#allocation2], %s632_s9 }
  0x2e   : > { %819 = dma.done.wait (%p1034_p7), %s210_s13, 512  }
  0x2f   : > { %821 = vsyncadd (%p1034_p7), %s210_s13, 4294966784  ;;  %v760_v0 = vld [vmem:[%s1025_s1 + $0x38] sm:$0xff]   ;;  %v761_v1 = vld [vmem:[%s1025_s1 + $0x30] sm:$0xff]   ;;  %s841_s17 = smov 64   ;;  %vm415_vm0 = vcmask 523264   ;;  %s842_s29 = smov 32  }
  0x30   : > { %677 = vmatprep.subr.bf16.mxu0 %v760_v0  ;;  %v762_v2 = vld [vmem:[%s1025_s1 + $0x28] sm:$0xff]   ;;  %v763_v3 = vld [vmem:[%s1025_s1 + $0x20] sm:$0xff]   ;;  %v764_v7 = vld [vmem:[%s1025_s1 + $0x18] sm:$0xff]   ;;  %vm496_vm1 = vcmask 261120   ;;  %s633_s30 = sshll.u32 %s624_s22, 2  ;;  %vm552_vm2 = vcmask 72704  }
  0x31   : > { %678 = vmatpush3.bf16.msra.mxu0 %v760_v0  ;;  %v248_v4 = vld [vmem:[%s951_s14] sm:$0xff]  ;;  %v249_v5 = vld [vmem:[%s951_s14 + $0x8] sm:$0xff]  ;;  %v768_v8 = vld [vmem:[%s1026_s2 + $0x18] sm:$0xff]   ;;  %p242_p8 = scmp.lt.s32.totalorder %s633_s30, 31 }
  0x32   : > { %679 = vmatprep.subr.bf16.mxu0 %v761_v1  ;;  %v252_v6 = vpack.c.bf16 %v249_v5, %v248_v4  ;;  %697 = vmatprep.subr.bf16.mxu1 %v768_v8  ;;  %v765_v9 = vld [vmem:[%s1025_s1 + $0x10] sm:$0xff]   ;;  %v766_v10 = vld [vmem:[%s1025_s1 + $0x8] sm:$0xff]   ;;  %v767_v11 = vld [vmem:[%s1025_s1] sm:$0xff]  }
  0x33   : > { %698 = vmatpush3.bf16.msra.mxu1 %v768_v8  ;;  %v250_v12 = vld [vmem:[%s951_s14 + $0x10] sm:$0xff]  ;;  %v251_v13 = vld [vmem:[%s951_s14 + $0x18] sm:$0xff]  ;;  %v770_v16 = vld [vmem:[%s1026_s2 + $0x8] sm:$0xff]   ;;  %s1040_s30 = smov (!%p242_p8, %s633_s30), 31 }
  0x34   : > { %693 = vmatprep.mubr.bf16.mxu0 %v252_v6  ;;  %v253_v14 = vpack.c.bf16 %v251_v13, %v250_v12  ;;  %v769_v15 = vld [vmem:[%s1026_s2 + $0x10] sm:$0xff]   ;;  %v771_v17 = vld [vmem:[%s1026_s2] sm:$0xff]   ;;  %v772_v33 = vld [vmem:[%s1027_s3 + $0x8] sm:$0xff]   ;;  %s634_s6 = sshll.u32 %s1040_s30, 3 }
  0x35   : > { %680 = vmatpush3.bf16.msra.mxu0 %v761_v1  ;;  %699 = vmatprep.subr.bf16.mxu1 %v769_v15  ;;  %v635_v18 = vld [vmem:[%s1028_s4] ss:$0 sm:$0xff]  ;;  %s245_s13 = scalar_lea.vmem %s1029_s5, %s634_s6 }
  0x36   : > { %681 = vmatprep.subr.bf16.mxu0 %v762_v2  ;;  %412 = vrot.lane.b32.xlu0 %v635_v18, %s841_s17  ;;  %v773_v34 = vld [vmem:[%s1027_s3] sm:$0xff]  }
  0x37   : > { %700 = vmatpush3.bf16.msra.mxu1 %v769_v15 }
  0x38   : > { %701 = vmatprep.subr.bf16.mxu1 %v770_v16 }
  0x39   : > { %682 = vmatpush3.bf16.msra.mxu0 %v762_v2 }
  0x3a   : > { %683 = vmatprep.subr.bf16.mxu0 %v763_v3  ;;  %493 = vrot.lane.b32.xlu0 %v635_v18, %s842_s29 }
  0x3b   : > { %702 = vmatpush3.bf16.msra.mxu1 %v770_v16 }
  0x3c   : > { %703 = vmatprep.subr.bf16.mxu1 %v771_v17 }
  0x3d   : > { %684 = vmatpush3.bf16.msra.mxu0 %v763_v3 }
  0x3e   : > { %685 = vmatprep.subr.bf16.mxu0 %v764_v7 }
  0x3f   : > { %704 = vmatpush3.bf16.msra.mxu1 %v771_v17 }
  0x40   : > { %709 = vmatprep.subr.bf16.mxu1 %v772_v33 }
  0x41   : > { %686 = vmatpush3.bf16.msra.mxu0 %v764_v7 }
  0x42   : > { %687 = vmatprep.subr.bf16.mxu0 %v765_v9 }
  0x45   : > { %688 = vmatpush3.bf16.msra.mxu0 %v765_v9 }
  0x46   : > { %689 = vmatprep.subr.bf16.mxu0 %v766_v10 }
  0x49   : > { %690 = vmatpush3.bf16.msra.mxu0 %v766_v10 }
  0x4a   : > { %691 = vmatprep.subr.bf16.mxu0 %v767_v11 }
  0x4d   : > { %692 = vmatpush3.bf16.msra.mxu0 %v767_v11 }
  0x50   : > { %694 = vmatmul.mubr.bf16.vlgmr.msra.gmra.mxu0 %v253_v14 }
  0xa8   : > { %v413_v37 = vpop.permute.xlu0 %412 }
  0xac   : > { %v494_v50 = vpop.permute.xlu0 %493 }
 0x110   : > { %v695_v19 = vpop.f32.mrf.mxu0 }
 0x111   : > { %v368_v24 = vadd.f32 %v695_v19, %v635_v18 }
 0x112   : > { %v359_v20 = vpop.f32.mrf.mxu0 }
 0x113   : > { %v360_v22 = vadd.f32 %v635_v18, %v359_v20  ;;  %v376_v30 = vmax.f32 %v368_v24, 0.0 }
 0x114   : > { %v696_v21 = vpop.f32.mrf.mxu0 }
 0x115   : > { %v371_v23 = vadd.f32 %v696_v21, %v635_v18  ;;  %v374_v28 = vmax.f32 %v360_v22, 0.0 }
 0x116   : > { %v362_v25 = vpop.f32.mrf.mxu0 }
 0x117   : > { %v363_v26 = vadd.f32 %v635_v18, %v362_v25  ;;  %v377_v27 = vmax.f32 %v371_v23, 0.0 }
 0x119   : > { %v375_v29 = vmax.f32 %v363_v26, 0.0  ;;  %v379_v32 = vpack.c.bf16 %v377_v27, %v376_v30 }
 0x11b   : > { %v378_v31 = vpack.c.bf16 %v375_v29, %v374_v28 }
 0x11d   : > { %705 = vmatprep.mubr.msk.bf16.mxu1 %vm415_vm0, %v378_v31 }
 0x11e   : > { %706 = vmatmul.mubr.msk.bf16.vlgmr.msra.gmra.mxu1 %vm415_vm0, %v379_v32 }
 0x11f   : > { %710 = vmatpush3.bf16.msra.mxu1 %v772_v33 }
 0x120   : > { %711 = vmatprep.subr.bf16.mxu1 %v773_v34 }
 0x123   : > { %712 = vmatpush3.bf16.msra.mxu1 %v773_v34 }
 0x1de   : > { %v707_v35 = vpop.f32.mrf.mxu1 }
 0x1df   : > { %v465_v41 = vadd.f32 %v707_v35, %v413_v37 }
 0x1e0   : > { %v456_v36 = vpop.f32.mrf.mxu1 }
 0x1e1   : > { %v457_v39 = vadd.f32 %v456_v36, %v413_v37  ;;  %v473_v47 = vmax.f32 %v465_v41, 0.0 }
 0x1e2   : > { %v708_v38 = vpop.f32.mrf.mxu1 }
 0x1e3   : > { %v468_v40 = vadd.f32 %v708_v38, %v413_v37  ;;  %v471_v45 = vmax.f32 %v457_v39, 0.0 }
 0x1e4   : > { %v459_v42 = vpop.f32.mrf.mxu1 }
 0x1e5   : > { %v460_v43 = vadd.f32 %v459_v42, %v413_v37  ;;  %v474_v44 = vmax.f32 %v468_v40, 0.0 }
 0x1e7   : > { %v472_v46 = vmax.f32 %v460_v43, 0.0  ;;  %v476_v49 = vpack.c.bf16 %v474_v44, %v473_v47 }
 0x1e9   : > { %v475_v48 = vpack.c.bf16 %v472_v46, %v471_v45 }
 0x1eb   : > { %713 = vmatprep.mubr.msk.bf16.mxu1 %vm496_vm1, %v475_v48 }
 0x1ec   : > { %714 = vmatmul.mubr.msk.bf16.vlgmr.msra.gmra.mxu1 %vm496_vm1, %v476_v49 }
 0x2ac   : > { %v715_v51 = vpop.f32.mrf.mxu1 }
 0x2ad   : > { %v546_v52 = vadd.f32 %v715_v51, %v494_v50 }
 0x2ae   : > { %v537_v53 = vpop.f32.mrf.mxu1 }
 0x2af   : > { %555 = vst.msk [vmem:[%s245_s13 + $0x10] sm:$0xff] %vm552_vm2, %v546_v52  ;;  %v538_v54 = vadd.f32 %v537_v53, %v494_v50 }
 0x2b0   : > { %v716_v55 = vpop.f32.mrf.mxu1 }
 0x2b1   : > { %553 = vst.msk [vmem:[%s245_s13] sm:$0xff] %vm552_vm2, %v538_v54  ;;  %v549_v56 = vadd.f32 %v716_v55, %v494_v50 }
 0x2b2   : > { %v540_v57 = vpop.f32.mrf.mxu1 }
 0x2b3   : > { %556 = vst.msk [vmem:[%s245_s13 + $0x18] sm:$0xff] %vm552_vm2, %v549_v56  ;;  %v541_v58 = vadd.f32 %v540_v57, %v494_v50 }
 0x2b5   : > { %554 = vst.msk [vmem:[%s245_s13 + $0x8] sm:$0xff] %vm552_vm2, %v541_v58 }
 0x2b6 PF: > { %p15_p9 = scmp.ge.s32.totalorder %s893_s23, 10   ;;  %s1035_s18 = smov %s828_s19 }
 0x2b7   : > { %s1036_s19 = smov %s832_s20  ;;  %s1037_s20 = smov %s903_s26 }
 0x2b8   : > { %s1038_s21 = smov %s893_s23  ;;  %17 = sbr.rel (!%p15_p9) target bundleno = 3 (0x3), region = 80 }
 0x2bd   :  { %579 = vsyncpa [#allocation3], 1 }
 0x2be   :  { %581 = vsyncpa [#allocation3 + $0x1], 1 }

</bundles_post_ra>
